<compile_context>
chip_gen: v5e
topology: v5e:2x2
jax: 0.10.0
libtpu: 0.0.40
codegen_flags: <defaults>
</compile_context>

<pallas_src>
import functools

import jax
import jax.numpy as jnp
from jax.experimental import pallas as pl
from jax.experimental.pallas import tpu as pltpu


_LANE = 128
_MIN_GRID_STEPS = 8  # >= 4 steps per TensorCore on v7x's two-core megacore.


def _round_up(x, m):
    return (x + m - 1) // m * m


def _vmem_capacity_bytes():
    """Physical per-core VMEM (128 MiB v5e/v6e, 64 MiB v7x); conservative fallback."""
    try:
        cap = getattr(pltpu.get_tpu_info(), "vmem_capacity_bytes", None)
        if cap:
            return int(cap)
    except Exception:
        pass
    return 64 * 1024 * 1024


# ----------------------- single-pass (fused) kernel -----------------------

def _gab_fused_kernel(x_ref, w1t_ref, b1_ref, w2t_ref, b2_ref, o_ref, *, inv_hw):
    # x_ref / o_ref: (Bt, C, HWp) in the NATIVE dtype.  Gate params are tiny f32.
    x = x_ref[...]
    # Global average pool over spatial, accumulated in f32 without materializing
    # an f32 copy of the whole block.  Padded lanes are zero, so dividing by the
    # TRUE H*W gives the exact mean.
    m = jnp.sum(x, axis=-1, dtype=jnp.float32) * inv_hw                    # (Bt, C)
    # 1x1 convs == tiny matmuls; latency-only, kept on jnp.dot for robustness.
    # TODO(synk): optional VPU broadcast+reduce gate to skip MXU round trips on v5e.
    z1 = jnp.dot(m, w1t_ref[...], preferred_element_type=jnp.float32) + b1_ref[...]
    z1 = jnp.maximum(z1, 0.0)                                              # (Bt, Cr)
    z2 = jnp.dot(z1, w2t_ref[...], preferred_element_type=jnp.float32) + b2_ref[...]
    z2 = jax.nn.sigmoid(z2)                                                # (Bt, C)
    # Scale in the native dtype (no full-block f32 temps / casts).
    o_ref[...] = x * z2.astype(o_ref.dtype)[:, :, None]


# --------------- two-pass fallback kernels (huge spatial slabs) ---------------

def _pool_kernel(x_ref, sum_ref, acc_ref):
    # Accumulate spatial partial sums in f32; HW grid axis is last / "arbitrary".
    @pl.when(pl.program_id(1) == 0)
    def _():
        acc_ref[...] = jnp.zeros_like(acc_ref)

    acc_ref[...] += jnp.sum(x_ref[...], axis=-1, keepdims=True, dtype=jnp.float32)

    @pl.when(pl.program_id(1) == pl.num_programs(1) - 1)
    def _():
        sum_ref[...] = acc_ref[...]


def _scale_kernel(x_ref, g_ref, o_ref):
    # x_ref: (1, C, hwt) native dtype; g_ref: (1, C, 1) native dtype.
    o_ref[...] = x_ref[...] * g_ref[...]


# --------------------------------- wrappers ---------------------------------

def _gab_fused(x, w1t, b1r, w2t, b2r, B, C, Cr, HW, HWp, x_dtype,
               per_batch_bytes, block_budget, vmem_limit, vmem_cap):
    # Batch tile: fit the block budget AND keep >= _MIN_GRID_STEPS grid steps.
    bt_budget = max(1, block_budget // per_batch_bytes)
    bt_steps = max(1, B // _MIN_GRID_STEPS)
    Bt = int(max(1, min(bt_budget, bt_steps)))

    # cdiv-style gridding: pad B with zero batches (their output rows are dropped).
    Bp = (B + Bt - 1) // Bt * Bt
    if Bp != B:
        x = jnp.pad(x, ((0, Bp - B), (0, 0), (0, 0)))
    n_steps = Bp // Bt

    x_spec_kwargs = {}
    if n_steps >= _MIN_GRID_STEPS and vmem_cap >= 100 * 1024 * 1024:
        # Extra input buffering keeps v5e/v6e's slower HBM busy across step
        # boundaries.  Never applied on v7x (64 MiB VMEM).
        x_spec_kwargs["pipeline_mode"] = pl.Buffered(3)

    kernel = functools.partial(_gab_fused_kernel, inv_hw=1.0 / HW)
    out = pl.pallas_call(
        kernel,
        out_shape=jax.ShapeDtypeStruct((Bp, C, HWp), x_dtype),
        grid_spec=pltpu.PrefetchScalarGridSpec(
            num_scalar_prefetch=0,
            grid=(n_steps,),
            in_specs=[
                pl.BlockSpec((Bt, C, HWp), lambda b: (b, 0, 0), **x_spec_kwargs),
                pl.BlockSpec((C, Cr), lambda b: (0, 0)),
                pl.BlockSpec((1, Cr), lambda b: (0, 0)),
                pl.BlockSpec((Cr, C), lambda b: (0, 0)),
                pl.BlockSpec((1, C), lambda b: (0, 0)),
            ],
            out_specs=pl.BlockSpec((Bt, C, HWp), lambda b: (b, 0, 0)),
        ),
        compiler_params=pltpu.CompilerParams(
            dimension_semantics=("parallel",),
            vmem_limit_bytes=vmem_limit,
        ),
    )(x, w1t, b1r, w2t, b2r)
    return out[:B]


def _gab_two_pass(x, w1t, b1r, w2t, b2r, B, C, Cr, HW, HWp, x_dtype,
                  block_budget, vmem_limit):
    """Fallback for huge (C, HW) slabs: tiled pool pass + tiled scale pass."""
    itemsize = jnp.dtype(x_dtype).itemsize
    # Spatial tile: largest multiple of 128 lanes fitting the budget (full C).
    hwt = max(_LANE, (block_budget // (C * itemsize)) // _LANE * _LANE)
    hwt = min(hwt, HWp)
    # TODO(synk): if C alone is so large that even a 128-lane tile exceeds the
    # budget, a channel-tiled variant would be needed.
    HWp2 = _round_up(HWp, hwt)
    if HWp2 != HWp:
        x = jnp.pad(x, ((0, 0), (0, 0), (0, HWp2 - HWp)))
    n_hw = HWp2 // hwt

    sums = pl.pallas_call(
        _pool_kernel,
        out_shape=jax.ShapeDtypeStruct((B, C, 1), jnp.float32),
        grid_spec=pltpu.PrefetchScalarGridSpec(
            num_scalar_prefetch=0,
            grid=(B, n_hw),
            in_specs=[pl.BlockSpec((1, C, hwt), lambda b, h: (b, 0, h))],
            out_specs=pl.BlockSpec((1, C, 1), lambda b, h: (b, 0, 0)),
            scratch_shapes=[pltpu.VMEM((1, C, 1), jnp.float32)],
        ),
        compiler_params=pltpu.CompilerParams(
            dimension_semantics=("parallel", "arbitrary"),
            vmem_limit_bytes=vmem_limit,
        ),
    )(x)

    # Gate math on the tiny pooled vector in plain JAX ((B, C)-sized, negligible).
    m = sums[:, :, 0] * (1.0 / HW)
    z1 = jnp.maximum(m @ w1t + b1r, 0.0)
    gate = jax.nn.sigmoid(z1 @ w2t + b2r).astype(x_dtype)
    gate = gate.reshape(B, C, 1)

    out = pl.pallas_call(
        _scale_kernel,
        out_shape=jax.ShapeDtypeStruct((B, C, HWp2), x_dtype),
        grid_spec=pltpu.PrefetchScalarGridSpec(
            num_scalar_prefetch=0,
            grid=(B, n_hw),
            in_specs=[
                pl.BlockSpec((1, C, hwt), lambda b, h: (b, 0, h)),
                pl.BlockSpec((1, C, 1), lambda b, h: (b, 0, 0)),
            ],
            out_specs=pl.BlockSpec((1, C, hwt), lambda b, h: (b, 0, h)),
        ),
        compiler_params=pltpu.CompilerParams(
            dimension_semantics=("parallel", "parallel"),
            vmem_limit_bytes=vmem_limit,
        ),
    )(x, gate)
    return out


def gab_forward(x_nchw, w1, b1, w2, b2):
    """x: (B, C, H, W). w1: (Cr, C, 1, 1), b1: (Cr,), w2: (C, Cr, 1, 1), b2: (C,)."""
    B, C, H, W = x_nchw.shape
    Cr = w1.shape[0]
    HW = H * W
    x_dtype = x_nchw.dtype
    itemsize = jnp.dtype(x_dtype).itemsize

    vmem_cap = _vmem_capacity_bytes()
    vmem_limit = int(min(vmem_cap * 3 // 4, 112 * 1024 * 1024))
    block_budget = (6 * 1024 * 1024 if vmem_cap >= 100 * 1024 * 1024
                    else 4 * 1024 * 1024)

    # Lane-dense minor axis: zero-pad H*W to a multiple of 128.  Zeros do not
    # perturb the pooled sum, and the padded output lanes (0 * gate) are sliced
    # off below.
    HWp = _round_up(HW, _LANE)
    x = x_nchw.reshape(B, C, HW)
    if HWp != HW:
        x = jnp.pad(x, ((0, 0), (0, 0), (0, HWp - HW)))

    # Tiny gate parameters in f32 (negligible footprint).
    w1t = w1.reshape(Cr, C).T.astype(jnp.float32)      # (C, Cr)
    w2t = w2.reshape(C, Cr).T.astype(jnp.float32)      # (Cr, C)
    b1r = b1.reshape(1, Cr).astype(jnp.float32)
    b2r = b2.reshape(1, C).astype(jnp.float32)

    per_batch_bytes = C * HWp * itemsize
    if per_batch_bytes <= block_budget:
        out = _gab_fused(x, w1t, b1r, w2t, b2r, B, C, Cr, HW, HWp, x_dtype,
                         per_batch_bytes, block_budget, vmem_limit, vmem_cap)
    else:
        out = _gab_two_pass(x, w1t, b1r, w2t, b2r, B, C, Cr, HW, HWp, x_dtype,
                            block_budget, vmem_limit)

    return out[:, :, :HW].reshape(B, C, H, W)


def gab_reference(x_nchw, w1, b1, w2, b2):
    """Plain-JAX reference matching the PyTorch forward."""
    B, C, H, W = x_nchw.shape
    Cr = w1.shape[0]
    xf = x_nchw.astype(jnp.float32)
    z = jnp.mean(xf, axis=(2, 3))                                          # (B, C)
    z = jnp.maximum(z @ w1.reshape(Cr, C).T.astype(jnp.float32) + b1, 0.0)
    z = jax.nn.sigmoid(z @ w2.reshape(C, Cr).T.astype(jnp.float32) + b2)
    return (xf * z[:, :, None, None]).astype(x_nchw.dtype)


if __name__ == "__main__":
    # Small shapes consistent with the module: input_dim=8, reduction=4.
    B, C, H, W = 2, 8, 16, 16
    reduction = 4
    Cr = C // reduction

    key = jax.random.PRNGKey(0)
    kx, k1, k2, k3, k4 = jax.random.split(key, 5)

    x = jax.random.normal(kx, (B, C, H, W), dtype=jnp.float32)
    w1 = jax.random.normal(k1, (Cr, C, 1, 1), dtype=jnp.float32) * 0.2
    b1 = jax.random.normal(k2, (Cr,), dtype=jnp.float32) * 0.1
    w2 = jax.random.normal(k3, (C, Cr, 1, 1), dtype=jnp.float32) * 0.2
    b2 = jax.random.normal(k4, (C,), dtype=jnp.float32) * 0.1

    out = jax.block_until_ready(gab_forward(x, w1, b1, w2, b2))
    ref = gab_reference(x, w1, b1, w2, b2)

    assert out.shape == (B, C, H, W)
    assert out.dtype == x.dtype
    assert jnp.allclose(out, ref, atol=1e-5, rtol=1e-5), "mismatch vs reference"

    print("KERNEL_OK")
</pallas_src>

<mosaic_0001>
module attributes {stable_mosaic.version = 11 : i64} {
  func.func @_gab_fused_kernel(%arg0: i32, %arg1: memref<1x8x256xf32, #tpu.memory_space<vmem>>, %arg2: memref<8x2xf32, #tpu.memory_space<vmem>>, %arg3: memref<1x2xf32, #tpu.memory_space<vmem>>, %arg4: memref<2x8xf32, #tpu.memory_space<vmem>>, %arg5: memref<1x8xf32, #tpu.memory_space<vmem>>, %arg6: memref<1x8x256xf32, #tpu.memory_space<vmem>>) attributes {dimension_semantics = [#tpu.dimension_semantics<parallel>], iteration_bounds = array<i64: 2>, scalar_prefetch = 0 : i64, scratch_operands = 0 : i64, tpu.core_type = #tpu.core_type<tc>, window_params = [{transform_indices = @transform_0, window_bounds = array<i64: 1, 8, 256>}, {pipeline_mode = #tpu.pipeline_mode<synchronous>, transform_indices = @transform_1, window_bounds = array<i64: 8, 2>}, {pipeline_mode = #tpu.pipeline_mode<synchronous>, transform_indices = @transform_2, window_bounds = array<i64: 1, 2>}, {pipeline_mode = #tpu.pipeline_mode<synchronous>, transform_indices = @transform_3, window_bounds = array<i64: 2, 8>}, {pipeline_mode = #tpu.pipeline_mode<synchronous>, transform_indices = @transform_4, window_bounds = array<i64: 1, 8>}, {transform_indices = @transform_5, window_bounds = array<i64: 1, 8, 256>}]} {
    %c0 = arith.constant 0 : index
    %c0_0 = arith.constant 0 : index
    %c0_1 = arith.constant 0 : index
    %0 = vector.load %arg1[%c0, %c0_0, %c0_1] : memref<1x8x256xf32, #tpu.memory_space<vmem>>, vector<1x8x256xf32>
    %cst = arith.constant dense<0.000000e+00> : vector<1x8xf32>
    %1 = vector.multi_reduction <add>, %0, %cst [2] : vector<1x8x256xf32> to vector<1x8xf32>
    %cst_2 = arith.constant 3.906250e-03 : f32
    %2 = vector.broadcast %cst_2 : f32 to vector<1x8xf32>
    %3 = arith.mulf %1, %2 : vector<1x8xf32>
    %c0_3 = arith.constant 0 : index
    %c0_4 = arith.constant 0 : index
    %4 = vector.load %arg2[%c0_3, %c0_4] : memref<8x2xf32, #tpu.memory_space<vmem>>, vector<8x2xf32>
    %cst_5 = arith.constant dense<0.000000e+00> : vector<1x2xf32>
    %5 = tpu.matmul %3, %4, %cst_5 {dimension_numbers = #tpu.dot_dimension_numbers<[1], [0], [0], [1], [0, 0, 1, 1], [], []>} : vector<1x8xf32>, vector<8x2xf32>, vector<1x2xf32> -> vector<1x2xf32>
    %c0_6 = arith.constant 0 : index
    %c0_7 = arith.constant 0 : index
    %6 = vector.load %arg3[%c0_6, %c0_7] : memref<1x2xf32, #tpu.memory_space<vmem>>, vector<1x2xf32>
    %7 = arith.addf %5, %6 : vector<1x2xf32>
    %cst_8 = arith.constant 0.000000e+00 : f32
    %8 = vector.broadcast %cst_8 : f32 to vector<1x2xf32>
    %9 = arith.maximumf %7, %8 : vector<1x2xf32>
    %c0_9 = arith.constant 0 : index
    %c0_10 = arith.constant 0 : index
    %10 = vector.load %arg4[%c0_9, %c0_10] : memref<2x8xf32, #tpu.memory_space<vmem>>, vector<2x8xf32>
    %cst_11 = arith.constant dense<0.000000e+00> : vector<1x8xf32>
    %11 = tpu.matmul %9, %10, %cst_11 {dimension_numbers = #tpu.dot_dimension_numbers<[1], [0], [0], [1], [0, 0, 1, 1], [], []>} : vector<1x2xf32>, vector<2x8xf32>, vector<1x8xf32> -> vector<1x8xf32>
    %c0_12 = arith.constant 0 : index
    %c0_13 = arith.constant 0 : index
    %12 = vector.load %arg5[%c0_12, %c0_13] : memref<1x8xf32, #tpu.memory_space<vmem>>, vector<1x8xf32>
    %13 = arith.addf %11, %12 : vector<1x8xf32>
    %14 = arith.negf %13 : vector<1x8xf32>
    %15 = math.exp %14 : vector<1x8xf32>
    %cst_14 = arith.constant 1.000000e+00 : f32
    %16 = vector.broadcast %cst_14 : f32 to vector<1x8xf32>
    %17 = arith.addf %16, %15 : vector<1x8xf32>
    %18 = arith.divf %16, %17 : vector<1x8xf32>
    %19 = vector.shape_cast %18 : vector<1x8xf32> to vector<1x8x1xf32>
    %20 = vector.broadcast %19 : vector<1x8x1xf32> to vector<1x8x256xf32>
    %21 = arith.mulf %0, %20 : vector<1x8x256xf32>
    %c0_15 = arith.constant 0 : index
    %c0_16 = arith.constant 0 : index
    %c0_17 = arith.constant 0 : index
    %22 = vector.load %arg6[%c0_15, %c0_16, %c0_17] : memref<1x8x256xf32, #tpu.memory_space<vmem>>, vector<1x8x256xf32>
    tpu.vector_store %arg6[%c0_15, %c0_16, %c0_17], %21 {strides = array<i32>} : memref<1x8x256xf32, #tpu.memory_space<vmem>>, vector<1x8x256xf32>,
    return
  }
  func.func @transform_0(%arg0: i32) -> (i32, i32, i32) {
    %c0_i32 = arith.constant 0 : i32
    %c0_i32_0 = arith.constant 0 : i32
    %c0_i32_1 = arith.constant 0 : i32
    return %arg0, %c0_i32, %c0_i32_0 : i32, i32, i32
  }
  func.func @transform_1(%arg0: i32) -> (i32, i32) {
    %c0_i32 = arith.constant 0 : i32
    %c0_i32_0 = arith.constant 0 : i32
    %c0_i32_1 = arith.constant 0 : i32
    return %c0_i32, %c0_i32_0 : i32, i32
  }
  func.func @transform_2(%arg0: i32) -> (i32, i32) {
    %c0_i32 = arith.constant 0 : i32
    %c0_i32_0 = arith.constant 0 : i32
    %c0_i32_1 = arith.constant 0 : i32
    return %c0_i32, %c0_i32_0 : i32, i32
  }
  func.func @transform_3(%arg0: i32) -> (i32, i32) {
    %c0_i32 = arith.constant 0 : i32
    %c0_i32_0 = arith.constant 0 : i32
    %c0_i32_1 = arith.constant 0 : i32
    return %c0_i32, %c0_i32_0 : i32, i32
  }
  func.func @transform_4(%arg0: i32) -> (i32, i32) {
    %c0_i32 = arith.constant 0 : i32
    %c0_i32_0 = arith.constant 0 : i32
    %c0_i32_1 = arith.constant 0 : i32
    return %c0_i32, %c0_i32_0 : i32, i32
  }
  func.func @transform_5(%arg0: i32) -> (i32, i32, i32) {
    %c0_i32 = arith.constant 0 : i32
    %c0_i32_0 = arith.constant 0 : i32
    %c0_i32_1 = arith.constant 0 : i32
    return %arg0, %c0_i32, %c0_i32_0 : i32, i32, i32
  }
}

</mosaic_0001>

<bundles_post_ra>
// kernel: tpu_custom_call.1
= control target key start
LH: loop header
LB: loop body
LE: loop exit
PB: predicated region body
PF: predicated region fallthrough
CT: control target
= control target key end

     0   :  { %10 = vsyncpa [#allocation3], 0  ;;  %s768_s0 = inlined_call_operand.hbm [shape: f32[2,8,256], index: 0, kind: input, shape index: {}]   ;;  %s769_s1 = inlined_call_operand.vmem [shape: f32[8,2], index: 1, kind: input, shape index: {}]   ;;  %s770_s2 = inlined_call_operand.vmem [shape: f32[1,2], index: 2, kind: input, shape index: {}]   ;;  %s771_s3 = inlined_call_operand.vmem [shape: f32[2,8], index: 3, kind: input, shape index: {}]   ;;  %s772_s4 = inlined_call_operand.vmem [shape: f32[1,8], index: 4, kind: input, shape index: {}]   ;;  %s773_s5 = inlined_call_operand.hbm [shape: f32[2,8,256], index: 5, kind: output, shape index: {}]  }
   0x1   :  { %12 = vsyncpa [#allocation3 + $0x1], 0 }
   0x2   :  { %13 = vsyncpa [#allocation4], 0 }
   0x3   :  { %15 = vsyncpa [#allocation4 + $0x1], 0  ;;  %s625_s18 = smov 0   ;;  %s627_s19 = smov 0  }
   0x4   :  { %s629_s20 = smov 0   ;;  %s631_s21 = smov 0  }
   0x5 LB: > { %s646_s22 = sadd.s32 4294967295, %s593_s21   ;;  %s426_s23 = sadd.s32 4294967294, %s593_s21   ;;  %s593_s21 = sphi %s631_s21, %s783_s21   ;;  %s589_s20 = sphi %s629_s20, %s782_s20   ;;  %s585_s19 = sphi %s627_s19, %s781_s19   ;;  %s581_s18 = sphi %s625_s18, %s780_s18  }
   0x6   : > { %s650_s24 = sadd.s32 1, %s593_s21   ;;  %s28_s25 = sadd.s32 1, %s589_s20 }
   0x7   : > { %s25_s26 = ssub.s32 %s593_s21, %s650_s24  ;;  %p35_p0 = scmp.ne.s32.totalorder %s589_s20, %s585_s19 }
   0x8   : > { %p26_p1 = scmp.eq.s32.totalorder %s25_s26, 0  ;;  %p36_p2 = scmp.eq.s32.totalorder %s593_s21, 0 }
   0x9   : > { %p41_p3 = scmp.ne.s32.totalorder %s585_s19, %s581_s18  ;;  %p42_p4 = scmp.eq.s32.totalorder %s646_s22, 0 }
   0xa   : > { %s662_s27 = scalar_select %p26_p1, %s589_s20, %s28_s25  }
   0xb   : > { %p664_p5 = por %p36_p2, %p35_p0  ;;  %p668_p6 = por %p42_p4, %p41_p3 }
   0xc   : > { %p149_p7 = scmp.eq.s32.totalorder %s646_s22, 1  ;;  %p155_p8 = scmp.eq.s32.totalorder %s426_s23, 1 }
   0xd   : > { %p458_p10 = scmp.lt.s32.totalorder %s593_s21, 2  ;;  %s187_s7 = sand.u32 1, %s589_s20  }
   0xe   : > { %p675_p11 = por %p149_p7, %p35_p0  ;;  %p679_p12 = por %p155_p8, %p41_p3 }
   0xf   : > { %s444_s8 = sshll.u32 %s593_s21, 4  ;;  %s429_s9 = sshll.u32 %s187_s7, 4 }
  0x10   : > { %s196_s12 = scalar_lea.hbm %s768_s0, %s444_s8  ;;  %s191_s14 = scalar_lea.vmem [#allocation2], %s429_s9 }
  0x11   : > { %s198_s13 = sshll.u32 %s196_s12, 4  ;;  %s200_s15 = sshll.u32 %s191_s14, 4  ;;  %s199_s13 = int_to_ptr.hbm [resolvable:$true] %s198_s13  ;;  %s201_s15 = int_to_ptr.vmem [resolvable:$true] %s200_s15 }
  0x12   : > { %p690_p13 = pnand %p458_p10, %p664_p5  ;;  %p432_p0 = scmp.ge.s32.totalorder %s593_s21, 1 }
  0x13   : > { %p205_p1 = scmp.lt.s32.totalorder %s593_s21, 3  ;;  %s188_s17 = scalar_lea.sflag [#allocation3], %s187_s7 }
  0x14   : > { %s497_s23 = sshra.s32 %s199_s13, 4  ;;  %p501_p3 = pneg %p690_p13  ;;  %s498_s23 = int_to_ptr.hbm [resolvable:$true] %s497_s23 }
  0x15   : > { %s499_s25 = scalar_lea.hbm %s498_s23, 16  ;;  %s504_s28 = scalar_lea.hbm %s768_s0, 32 }
  0x16   : > { %p500_p2 = scmp.ne.s32.totalorder %s498_s23, %s499_s25  ;;  %p505_p5 = scmp.lt.s32.totalorder %s498_s23, %s768_s0 }
  0x17   : > { %p506_p8 = scmp.lt.s32.totalorder %s504_s28, %s499_s25 }
  0x18   : > { %p502_p4 = pnand %p501_p3, %p500_p2 }
  0x19   : > { %p507_p10 = por %p506_p8, %p505_p5 }
  0x1a   : > { %p503_p7 = pneg %p502_p4 }
  0x1c   : > { %p508_p9 = pnand %p507_p10, %p503_p7 }
  0x1e   : > { %511 = shalt.err (!%p508_p9)
}
  0x1f   : > { %453 = dma.hbm_to_vmem [thread:$0]  (!%p690_p13), %s199_s13, 256, %s201_s15, %s188_s17  }
  0x20   : > { %p206_p2 = pnand %p432_p0, %p205_p1 }
  0x21   : > { %s711_s7 = sand.u32 (!%p206_p2), 1, %s585_s19  }
  0x22   : > { %209 = sbr.rel (%p206_p2) target bundleno = 572 (0x23c), region = 40  ;;  %s433_s11 = sshll.u32 (!%p206_p2), %s711_s7, 4 }
  0x23   : > { %s212_s12 = scalar_lea.sflag (!%p206_p2), [#allocation3], %s711_s7  ;;  %s215_s14 = scalar_lea.vmem (!%p206_p2), [#allocation2], %s433_s11 }
  0x27   : > { %572 = dma.done.wait (%p668_p6), %s212_s12, 256  }
  0x28   : > { %574 = vsyncadd (%p668_p6), %s212_s12, 4294967040  ;;  %v243_v0 = vld [vmem:[%s215_s14] sm:$0xff]  ;;  %v244_v1 = vld [vmem:[%s215_s14 + $0x8] sm:$0xff]  ;;  %v252_v4 = vlaneseq  ;;  %vm255_vm0 = vcmask 64512   ;;  %vm285_vm1 = vcmask 1041408   ;;  %vm281_vm2 = vcmask 15360  }
  0x29   : > { %v245_v2 = vadd.f32 %v244_v1, %v243_v0  ;;  %v249_v3 = vld [vmem:[%s769_s1] sm:$0xff]  ;;  %s445_s8 = sshll.u32 %s646_s22, 4  ;;  %s242_s12 = scalar_lea.vmem [#allocation5], %s433_s11 }
  0x2a   : > { %273 = vmatpush.msra.mxu0 %v249_v3  ;;  %v253_v5 = vand.u32 127, %v252_v4  ;;  %v279_v9 = vld [vmem:[%s771_s3] sm:$0x3]  ;;  %v330_v14 = vshrl.u32 %v252_v4, 7  ;;  %s351_s10 = scalar_lea.hbm %s773_s5, %s445_s8  ;;  %s353_s14 = sshll.u32 %s242_s12, 4  ;;  %s354_s14 = int_to_ptr.vmem [resolvable:$true] %s353_s14 }
  0x2b   : > { %246 = vadd.xlane.f32.xlu0 %v245_v2  ;;  %436 = vmatpush.msk.msra.mxu1 %vm285_vm1, %v279_v9  ;;  %v250_v10 = vld [vmem:[%s770_s2] sm:$0x1]  ;;  %s355_s13 = sshll.u32 %s351_s10, 4  ;;  %s340_s15 = scalar_lea.sflag [#allocation4], %s711_s7  ;;  %s356_s13 = int_to_ptr.hbm [resolvable:$true] %s355_s13 }
  0x2c   : > { %492 = vset.pattern.permute.xlu0 %v330_v14  ;;  %v280_v15 = vld [vmem:[%s772_s4] sm:$0x1]  ;;  %s541_s16 = sshra.s32 %s356_s13, 4  ;;  %s547_s11 = scalar_lea.hbm %s773_s5, 32  ;;  %s542_s16 = int_to_ptr.hbm [resolvable:$true] %s541_s16 }
  0x2d   : > { %s543_s22 = scalar_lea.hbm %s542_s16, 16  ;;  %p548_p0 = scmp.lt.s32.totalorder %s542_s16, %s773_s5 }
  0x2e   : > { %p544_p6 = scmp.ne.s32.totalorder %s542_s16, %s543_s22  ;;  %p549_p1 = scmp.lt.s32.totalorder %s547_s11, %s543_s22 }
  0x30   : > { %p545_p9 = pnand %p544_p6, %p675_p11  ;;  %p550_p3 = por %p549_p1, %p548_p0 }
  0x32   : > { %p546_p13 = pneg %p545_p9 }
  0x34   : > { %p551_p4 = pnand %p550_p3, %p546_p13 }
  0x9e   : > { %v247_v6 = vpop.xlane.xlu0 %246 }
  0x9f   : > { %v248_v7 = vmul.f32 0.00390625, %v247_v6 }
  0xa1   : > { %v254_v8 = vperm.slane %v248_v7, %v253_v5 }
  0xa3   : > { %435 = vmatmul.msk.f32.vlgmr.msra.gmra.mxu0 %vm255_vm0, %v254_v8 }
 0x120   : > { %v275_v11 = vpop.f32.mrf.mxu0 }
 0x121   : > { %v276_v12 = vadd.f32 %v275_v11, %v250_v10 }
 0x123   : > { %v278_v13 = vmax.f32 %v276_v12, 0.0 }
 0x125   : > { %437 = vmatmul.msk.f32.vlgmr.msra.gmra.mxu1 %vm281_vm2, %v278_v13 }
 0x1a2   : > { %v306_v16 = vpop.f32.mrf.mxu1 }
 0x1a3   : > { %v307_v17 = vadd.f32 %v306_v16, %v280_v15 }
 0x1a5   : > { %v438_v18 = vmul.f32 -1.442695, %v307_v17 }
 0x1a7   : > { %493 = vpow2.f32 %v438_v18 }
 0x1ad   : > { %v494_v19 = vpop.eup %493 }
 0x1ae   : > { %v312_v20 = vadd.f32 1.0, %v494_v19 }
 0x1b0   : > { %495 = vrcp.f32 %v312_v20  ;;  %v324_v24 = vand.u32 2147483648, %v312_v20  ;;  %v322_v26 = vand.u32 2147483647, %v312_v20  ;;  %vm318_vm4 = vweird.f32 %v312_v20 }
 0x1b2   : > { %v325_v28 = vor.u32 1.1754944e-38, %v324_v24  ;;  %vm323_vm6 = vcmp.eq.f32.partialorder %v322_v26, 8.507059e+37 }
 0x1b6   : > { %v496_v21 = vpop.eup %495 }
 0x1b7   : > { %v314_v22 = vmul.f32 %v496_v21, %v312_v20  ;;  %vm319_vm3 = vweird.f32 %v496_v21 }
 0x1b8   : > { %vm320_vm5 = vmor %vm318_vm4, %vm319_vm3 }
 0x1b9   : > { %v315_v23 = vsub.f32 1.0, %v314_v22 }
 0x1bb   : > { %v316_v25 = vmul.f32 %v496_v21, %v315_v23 }
 0x1bd   : > { %v317_v27 = vadd.f32 %v496_v21, %v316_v25 }
 0x1bf   : > { %v321_v29 = vsel %vm320_vm5, %v496_v21, %v317_v27 }
 0x1c0   : > { %v326_v30 = vsel %vm323_vm6, %v325_v28, %v321_v29 }
 0x1c1   : > { %v328_v31 = vperm.slane %v326_v30, 0 }
 0x1c3   : > { %333 = vperm.xlu0 %492, %v328_v31  }
 0x235   : > { %v334_v32 = vpop.permute.xlu0 %333 }
 0x236   : > { %v335_v33 = vmul.f32 %v334_v32, %v243_v0  ;;  %v336_v34 = vmul.f32 %v334_v32, %v244_v1 }
 0x238   : > { %337 = vst [vmem:[%s242_s12] sm:$0xff] %v335_v33 }
 0x239   : > { %338 = vst [vmem:[%s242_s12 + $0x8] sm:$0xff] %v336_v34 }
 0x23a   : > { %554 = shalt.err (!%p551_p4)
}
 0x23b   : > { %448 = dma.vmem_to_hbm [thread:$0]  (%p675_p11), %s354_s14, 256, %s356_s13, %s340_s15  }
 0x23c PF: > { %s367_s7 = sand.u32 1, %s581_s18   ;;  %p779_p7 = scmp.ge.s32.totalorder %s593_s21, 2 }
 0x23d   : > { %s368_s26 = scalar_lea.sflag [#allocation4], %s367_s7 }
 0x23e   : > { %p455_p5 = pnand %p779_p7, %p679_p12 }
 0x240   : > { %p456_p8 = pneg %p455_p5 }
 0x242   : > { %576 = dma.done.wait (%p456_p8), %s368_s26, 256  }
 0x243   : > { %578 = vsyncadd (%p456_p8), %s368_s26, 4294967040  ;;  %p18_p10 = scmp.ge.s32.totalorder %s650_s24, 4   ;;  %s780_s18 = smov %s585_s19 }
 0x244   : > { %s781_s19 = smov %s589_s20  ;;  %s782_s20 = smov %s662_s27 }
 0x245   : > { %s783_s21 = smov %s650_s24  ;;  %20 = sbr.rel (!%p18_p10) target bundleno = 5 (0x5), region = 85 }
 0x24a   :  { %374 = vsyncpa [#allocation3], 1 }
 0x24b   :  { %376 = vsyncpa [#allocation3 + $0x1], 1 }
 0x24c   :  { %377 = vsyncpa [#allocation4], 1 }
 0x24d   :  { %379 = vsyncpa [#allocation4 + $0x1], 1 }

</bundles_post_ra>
